<compile_context>
chip_gen: v5e
topology: v5e:2x2
jax: 0.10.0
libtpu: 0.0.40
codegen_flags: <defaults>
</compile_context>

<pallas_src>
import functools
import math

import jax
import jax.numpy as jnp
from jax.experimental import pallas as pl
from jax.experimental.pallas import tpu as pltpu


def _round_up(a, b):
    return ((a + b - 1) // b) * b


@functools.lru_cache(maxsize=1)
def _chip_config():
    """Generation-aware tiling knobs (trace-time only; safe fallback)."""
    kind = ""
    try:
        kind = jax.devices()[0].device_kind.lower()
    except Exception:
        pass
    if "v7" in kind:
        # v7x: 2 TensorCores/chip, ~3.2 TB/s HBM per TC, 64 MiB VMEM per TC.
        return {
            "num_tc": 2,
            "target_block_bytes": 4 * 1024 * 1024,
            "vmem_limit_bytes": 48 * 1024 * 1024,
        }
    # v5e / v6e: single TensorCore, 128 MiB VMEM; 2 MiB blocks are already
    # ~85% of the measured HBM roofline.
    return {
        "num_tc": 1,
        "target_block_bytes": 2 * 1024 * 1024,
        "vmem_limit_bytes": 64 * 1024 * 1024,
    }


def _block_fits(block_elems, itemsize, vmem_limit_bytes):
    # Double-buffered input + output in the HBM dtype, plus ~3 live f32
    # temporaries (x upcast, exp, product) inside the kernel.
    need = 4 * block_elems * itemsize + 3 * block_elems * 4
    return need <= int(0.8 * vmem_limit_bytes)


def _balance_tile(total, tile, unit, num_tc):
    """Shrink `tile` (kept a multiple of `unit`) so the grid-step count over
    `total` is a multiple of num_tc — keeps both v7x TensorCores busy and
    balanced. No-op on single-TC parts (v5e/v6e)."""
    if num_tc <= 1 or total <= unit:
        return tile
    steps = pl.cdiv(total, tile)
    if steps % num_tc == 0 or steps >= 4 * num_tc:
        return tile
    target = _round_up(steps, num_tc)
    for _ in range(8):
        cand = min(tile, max(unit, _round_up(pl.cdiv(total, target), unit)))
        if pl.cdiv(total, cand) % num_tc == 0:
            return cand
        target += num_tc
    return tile


def _softmax_kernel(x_ref, o_ref, *, axis):
    x = x_ref[...].astype(jnp.float32)
    m = jnp.max(x, axis=axis, keepdims=True)          # XLU reduce
    e = jnp.exp(x - m)                                 # EUP
    s = jnp.sum(e, axis=axis, keepdims=True)
    # approx=False: HBM-bound anyway; keeps full precision for tight tolerances.
    o_ref[...] = (e * pl.reciprocal(s, approx=False)).astype(o_ref.dtype)


def _cost(x):
    return pl.CostEstimate(
        flops=5 * x.size,
        transcendentals=x.size,
        bytes_accessed=2 * x.size * x.dtype.itemsize,
    )


def _softmax_last_axis(x2, cfg):
    """Softmax over the last axis of a 2-D array (rows, N)."""
    rows, n = x2.shape
    itemsize = x2.dtype.itemsize

    # Largest multiple-of-8 row tile under the per-block byte budget, measured
    # in the input's HBM dtype.
    cap_rows = max(8, (cfg["target_block_bytes"] // max(1, n * itemsize)) // 8 * 8)
    tile_rows = min(cap_rows, _round_up(rows, 8))
    tile_rows = _balance_tile(rows, tile_rows, 8, cfg["num_tc"])

    # The whole softmax axis must be resident in one block.
    if not _block_fits(tile_rows * n, itemsize, cfg["vmem_limit_bytes"]):
        # TODO(synk): online-softmax K-split over N instead of XLA fallback.
        return jax.nn.softmax(x2, axis=-1)

    grid = (pl.cdiv(rows, tile_rows),)
    return pl.pallas_call(
        functools.partial(_softmax_kernel, axis=-1),
        out_shape=jax.ShapeDtypeStruct((rows, n), x2.dtype),
        grid_spec=pltpu.PrefetchScalarGridSpec(
            num_scalar_prefetch=0,
            grid=grid,
            in_specs=[pl.BlockSpec((tile_rows, n), lambda i: (i, 0))],
            out_specs=pl.BlockSpec((tile_rows, n), lambda i: (i, 0)),
        ),
        compiler_params=pltpu.CompilerParams(
            dimension_semantics=("parallel",),
            vmem_limit_bytes=cfg["vmem_limit_bytes"],
        ),
        cost_estimate=_cost(x2),
    )(x2)


def _softmax_middle_axis(x3, cfg):
    """Softmax over axis=1 of a 3-D array (outer, N, inner) — no transpose:
    the trailing dims stay on the lane axis (lane-dense loads/stores) and the
    reduction runs over the sublane axis."""
    outer, n, inner = x3.shape
    itemsize = x3.dtype.itemsize
    budget = cfg["target_block_bytes"]

    # Prefer the full trailing dim (contiguous HBM DMA per (outer, N) slab and
    # a degenerate inner grid axis); only shrink tile_inner in 128-lane steps
    # when even tile_outer == 1 would blow the budget.
    if inner >= 128 and n * inner * itemsize > budget:
        tile_inner = max(128, (budget // max(1, n * itemsize)) // 128 * 128)
    else:
        tile_inner = inner
    per_outer_bytes = max(1, n * tile_inner * itemsize)
    tile_outer = max(1, min(budget // per_outer_bytes, outer))
    tile_outer = _balance_tile(outer, tile_outer, 1, cfg["num_tc"])

    if not _block_fits(tile_outer * n * tile_inner, itemsize,
                       cfg["vmem_limit_bytes"]):
        # TODO(synk): online-softmax split over N (sublane axis) for huge N.
        return jax.nn.softmax(x3, axis=1)

    grid = (pl.cdiv(outer, tile_outer), pl.cdiv(inner, tile_inner))
    return pl.pallas_call(
        functools.partial(_softmax_kernel, axis=1),
        out_shape=jax.ShapeDtypeStruct((outer, n, inner), x3.dtype),
        grid_spec=pltpu.PrefetchScalarGridSpec(
            num_scalar_prefetch=0,
            grid=grid,
            in_specs=[pl.BlockSpec((tile_outer, n, tile_inner),
                                   lambda i, j: (i, 0, j))],
            out_specs=pl.BlockSpec((tile_outer, n, tile_inner),
                                   lambda i, j: (i, 0, j)),
        ),
        compiler_params=pltpu.CompilerParams(
            dimension_semantics=("parallel", "parallel"),
            vmem_limit_bytes=cfg["vmem_limit_bytes"],
        ),
        cost_estimate=_cost(x3),
    )(x3)


@functools.partial(jax.jit, static_argnames=("dim",))
def pallas_softmax(x, dim):
    axis = dim % x.ndim
    n = x.shape[axis]
    outer = math.prod(x.shape[:axis])
    inner = math.prod(x.shape[axis + 1:])
    cfg = _chip_config()

    if inner == 1:
        # Softmax axis is (effectively) last: free reshape to (rows, N).
        out = _softmax_last_axis(x.reshape(outer, n), cfg)
    else:
        # Softmax over a non-last axis: free reshape to (outer, N, inner),
        # reduce over sublanes inside the kernel — no HBM transposes.
        out = _softmax_middle_axis(x.reshape(outer, n, inner), cfg)
    return out.reshape(x.shape)


if __name__ == "__main__":
    key = jax.random.PRNGKey(0)
    shape = (2, 4, 16, 16)   # matches the module's (shape, dim) ctor
    dim = -1                 # softmax along the last dim

    x = jax.random.normal(key, shape, dtype=jnp.float32)

    out = jax.block_until_ready(pallas_softmax(x, dim))
    ref = jax.nn.softmax(x, axis=dim)
    assert out.shape == x.shape
    assert jnp.allclose(out, ref, atol=1e-5, rtol=1e-5)

    # Also exercise the transpose-free sublane-reduction path (dim != -1).
    out_c = jax.block_until_ready(pallas_softmax(x, 1))
    ref_c = jax.nn.softmax(x, axis=1)
    assert jnp.allclose(out_c, ref_c, atol=1e-5, rtol=1e-5)

    print("KERNEL_OK")
</pallas_src>

<mosaic_0001>
module attributes {stable_mosaic.version = 11 : i64} {
  func.func @_softmax_kernel(%arg0: i32, %arg1: memref<128x16xf32, #tpu.memory_space<vmem>>, %arg2: memref<128x16xf32, #tpu.memory_space<vmem>>) attributes {dimension_semantics = [#tpu.dimension_semantics<parallel>], iteration_bounds = array<i64: 1>, scalar_prefetch = 0 : i64, scratch_operands = 0 : i64, tpu.core_type = #tpu.core_type<tc>, window_params = [{transform_indices = @transform_0, window_bounds = array<i64: 128, 16>}, {transform_indices = @transform_1, window_bounds = array<i64: 128, 16>}]} {
    %c0 = arith.constant 0 : index
    %c0_0 = arith.constant 0 : index
    %0 = vector.load %arg1[%c0, %c0_0] : memref<128x16xf32, #tpu.memory_space<vmem>>, vector<128x16xf32>
    %cst = arith.constant dense<0xFF800000> : vector<128xf32>
    %1 = vector.multi_reduction <maximumf>, %0, %cst [1] : vector<128x16xf32> to vector<128xf32>
    %2 = vector.shape_cast %1 : vector<128xf32> to vector<128x1xf32>
    %3 = vector.broadcast %2 : vector<128x1xf32> to vector<128x16xf32>
    %4 = arith.subf %0, %3 : vector<128x16xf32>
    %5 = math.exp %4 : vector<128x16xf32>
    %cst_1 = arith.constant dense<0.000000e+00> : vector<128xf32>
    %6 = vector.multi_reduction <add>, %5, %cst_1 [1] : vector<128x16xf32> to vector<128xf32>
    %7 = vector.shape_cast %6 : vector<128xf32> to vector<128x1xf32>
    %8 = tpu.reciprocal %7 : vector<128x1xf32> -> vector<128x1xf32>
    %9 = vector.broadcast %8 : vector<128x1xf32> to vector<128x16xf32>
    %10 = arith.mulf %5, %9 : vector<128x16xf32>
    %c0_2 = arith.constant 0 : index
    %c0_3 = arith.constant 0 : index
    %11 = vector.load %arg2[%c0_2, %c0_3] : memref<128x16xf32, #tpu.memory_space<vmem>>, vector<128x16xf32>
    tpu.vector_store %arg2[%c0_2, %c0_3], %10 {strides = array<i32>} : memref<128x16xf32, #tpu.memory_space<vmem>>, vector<128x16xf32>,
    return
  }
  func.func @transform_0(%arg0: i32) -> (i32, i32) {
    %c0_i32 = arith.constant 0 : i32
    %c0_i32_0 = arith.constant 0 : i32
    return %arg0, %c0_i32 : i32, i32
  }
  func.func @transform_1(%arg0: i32) -> (i32, i32) {
    %c0_i32 = arith.constant 0 : i32
    %c0_i32_0 = arith.constant 0 : i32
    return %arg0, %c0_i32 : i32, i32
  }
}

</mosaic_0001>

<bundles_post_ra>
// kernel: pallas_softmax.1
= control target key start
LH: loop header
LB: loop body
LE: loop exit
PB: predicated region body
PF: predicated region fallthrough
CT: control target
= control target key end

     0   :  { %6 = vsyncpa [#allocation3], 0  ;;  %s936_s0 = inlined_call_operand.hbm [shape: f32[128,16], index: 0, kind: input, shape index: {}]   ;;  %s937_s1 = inlined_call_operand.hbm [shape: f32[128,16], index: 1, kind: output, shape index: {}]  }
   0x1   :  { %7 = vsyncpa [#allocation4], 0  ;;  %s12_s8 = sshll.u32 %s936_s0, 4  ;;  %s581_s9 = smov [#allocation2]   ;;  %s13_s8 = int_to_ptr.hbm [resolvable:$true] %s12_s8 }
   0x2   :  { %s14_s10 = sshll.u32 %s581_s9, 4  ;;  %s582_s11 = smov 128   ;;  %s15_s10 = int_to_ptr.vmem [resolvable:$true] %s14_s10 }
   0x3   :  { %s583_s12 = smov 8  }
   0x4   :  { %20 = dma.hbm_to_vmem [thread:$0]  %s13_s8, 2048, %s15_s10, [#allocation3], %s582_s11, %s582_s11, %s583_s12  }
   0x5   :  { %577 = dma.done.wait [#allocation3], 2048  }
   0x6   :  { %578 = vsyncadd [#allocation3], 4294965248  ;;  %vm41_vm0 = vcmask 130048   ;;  %v601_v0 = vld [vmem:[#allocation2 + $0x20] sm:$0xff]  ;;  %v27_v1 = vld [vmem:[#allocation2 + $0x10] sm:$0xff]  ;;  %s584_s0 = smov [#allocation5]  }
   0x7   :  { %v25_v2 = vld [vmem:[#allocation2] sm:$0xff]  ;;  %v54_v3 = vsel %vm41_vm0, %v601_v0, -inf  ;;  %v48_v4 = vsel %vm41_vm0, %v27_v1, -inf  ;;  %v30_v6 = vld [vmem:[#allocation2 + $0x28] sm:$0xff]  ;;  %v28_v7 = vld [vmem:[#allocation2 + $0x18] sm:$0xff]  ;;  %s446_s13 = sshll.u32 %s584_s0, 4  ;;  %s447_s13 = int_to_ptr.vmem [resolvable:$true] %s446_s13 }
   0x8   :  { %v42_v5 = vsel %vm41_vm0, %v25_v2, -inf  ;;  %55 = vmax.xlane.f32.xlu2 %v54_v3  ;;  %49 = vmax.xlane.f32.xlu1 %v48_v4  ;;  %v26_v8 = vld [vmem:[#allocation2 + $0x8] sm:$0xff]  ;;  %v57_v9 = vsel %vm41_vm0, %v30_v6, -inf  ;;  %v51_v10 = vsel %vm41_vm0, %v28_v7, -inf  ;;  %v610_v12 = vld [vmem:[#allocation2 + $0x40] sm:$0xff]  ;;  %v612_v13 = vld [vmem:[#allocation2 + $0x38] sm:$0xff] }
   0x9   :  { %43 = vmax.xlane.f32.xlu0 %v42_v5  ;;  %v45_v11 = vsel %vm41_vm0, %v26_v8, -inf  ;;  %v614_v14 = vld [vmem:[#allocation2 + $0x30] sm:$0xff]  ;;  %v66_v15 = vsel %vm41_vm0, %v610_v12, -inf  ;;  %v63_v16 = vsel %vm41_vm0, %v612_v13, -inf  ;;  %v622_v18 = vld [vmem:[#allocation2 + $0x58] sm:$0xff]  ;;  %v626_v20 = vld [vmem:[#allocation2 + $0x48] sm:$0xff] }
   0xa   :  { %v60_v17 = vsel %vm41_vm0, %v614_v14, -inf  ;;  %v624_v19 = vld [vmem:[#allocation2 + $0x50] sm:$0xff]  ;;  %v75_v21 = vsel %vm41_vm0, %v622_v18, -inf  ;;  %v69_v23 = vsel %vm41_vm0, %v626_v20, -inf  ;;  %v636_v25 = vld [vmem:[#allocation2 + $0x68] sm:$0xff]  ;;  %v638_v26 = vld [vmem:[#allocation2 + $0x60] sm:$0xff] }
   0xb   :  { %v72_v22 = vsel %vm41_vm0, %v624_v19, -inf  ;;  %v634_v24 = vld [vmem:[#allocation2 + $0x70] sm:$0xff]  ;;  %v81_v28 = vsel %vm41_vm0, %v636_v25, -inf  ;;  %v78_v29 = vsel %vm41_vm0, %v638_v26, -inf  ;;  %v646_v30 = vld [vmem:[#allocation2 + $0x78] sm:$0xff]  ;;  %s448_s16 = sshll.u32 %s937_s1, 4  ;;  %s449_s16 = int_to_ptr.hbm [resolvable:$true] %s448_s16 }
   0xc   :  { %v84_v27 = vsel %vm41_vm0, %v634_v24, -inf  ;;  %v87_v31 = vsel %vm41_vm0, %v646_v30, -inf }
  0x10   :  { %58 = vmax.xlane.f32.xlu2 %v57_v9  ;;  %52 = vmax.xlane.f32.xlu1 %v51_v10 }
  0x11   :  { %46 = vmax.xlane.f32.xlu0 %v45_v11 }
  0x18   :  { %67 = vmax.xlane.f32.xlu2 %v66_v15  ;;  %64 = vmax.xlane.f32.xlu1 %v63_v16 }
  0x19   :  { %61 = vmax.xlane.f32.xlu0 %v60_v17 }
  0x20   :  { %76 = vmax.xlane.f32.xlu2 %v75_v21  ;;  %73 = vmax.xlane.f32.xlu1 %v72_v22 }
  0x21   :  { %70 = vmax.xlane.f32.xlu0 %v69_v23 }
  0x28   :  { %85 = vmax.xlane.f32.xlu2 %v84_v27  ;;  %82 = vmax.xlane.f32.xlu1 %v81_v28 }
  0x29   :  { %79 = vmax.xlane.f32.xlu0 %v78_v29 }
  0x31   :  { %88 = vmax.xlane.f32.xlu0 %v87_v31 }
  0x7b   :  { %v56_v32 = vpop.xlane.xlu2 %55  ;;  %v50_v33 = vpop.xlane.xlu1 %49 }
  0x7c   :  { %v92_v34 = vsub.f32 %v27_v1, %v50_v33  ;;  %v44_v35 = vpop.xlane.xlu0 %43  ;;  %v94_v48 = vsub.f32 %v601_v0, %v56_v32 }
  0x7d   :  { %v90_v36 = vsub.f32 %v25_v2, %v44_v35 }
  0x7e   :  { %v110_v37 = vmul.f32 1.442695, %v92_v34  ;;  %v114_v53 = vmul.f32 1.442695, %v94_v48 }
  0x7f   :  { %v106_v38 = vmul.f32 1.442695, %v90_v36 }
  0x80   :  { %465 = vpow2.f32 %v110_v37 }
  0x81   :  { %467 = vpow2.f32 %v106_v38 }
  0x83   :  { %v59_v39 = vpop.xlane.xlu2 %58  ;;  %v53_v40 = vpop.xlane.xlu1 %52 }
  0x84   :  { %v95_v41 = vsub.f32 %v30_v6, %v59_v39  ;;  %v93_v42 = vsub.f32 %v28_v7, %v53_v40  ;;  %v47_v43 = vpop.xlane.xlu0 %46 }
  0x85   :  { %v91_v44 = vsub.f32 %v26_v8, %v47_v43 }
  0x86   :  { %v116_v45 = vmul.f32 1.442695, %v95_v41  ;;  %v112_v46 = vmul.f32 1.442695, %v93_v42  ;;  %v650_v47 = vpop.eup %465 }
  0x87   :  { %v108_v49 = vmul.f32 1.442695, %v91_v44  ;;  %v653_v50 = vpop.eup %467  ;;  %v144_v51 = vsel %vm41_vm0, %v650_v47, 0.0 }
  0x88   :  { %469 = vpow2.f32 %v116_v45  ;;  %145 = vadd.xlane.f32.xlu0 %v144_v51  ;;  %v138_v52 = vsel %vm41_vm0, %v653_v50, 0.0 }
  0x89   :  { %471 = vpow2.f32 %v112_v46  ;;  %139 = vadd.xlane.f32.xlu1 %v138_v52 }
  0x8a   :  { %473 = vpow2.f32 %v108_v49 }
  0x8b   :  { %v68_v54 = vpop.xlane.xlu2 %67  ;;  %v65_v55 = vpop.xlane.xlu1 %64  ;;  %475 = vpow2.f32 %v114_v53 }
  0x8c   :  { %v98_v56 = vsub.f32 %v610_v12, %v68_v54  ;;  %v62_v57 = vpop.xlane.xlu0 %61  ;;  %v97_v61 = vsub.f32 %v612_v13, %v65_v55 }
  0x8d   :  { %v96_v58 = vsub.f32 %v614_v14, %v62_v57 }
  0x8e   :  { %v661_v59 = vpop.eup %469  ;;  %v122_v60 = vmul.f32 1.442695, %v98_v56  ;;  %v120_v4 = vmul.f32 1.442695, %v97_v61 }
  0x8f   :  { %v664_v62 = vpop.eup %471  ;;  %v118_v63 = vmul.f32 1.442695, %v96_v58  ;;  %v153_v0 = vsel %vm41_vm0, %v661_v59, 0.0 }
  0x90   :  { %v668_v1 = vpop.eup %473  ;;  %477 = vpow2.f32 %v122_v60  ;;  %v147_v2 = vsel %vm41_vm0, %v664_v62, 0.0  ;;  %154 = vadd.xlane.f32.xlu0 %v153_v0 }
  0x91   :  { %479 = vpow2.f32 %v118_v63  ;;  %v141_v3 = vsel %vm41_vm0, %v668_v1, 0.0  ;;  %148 = vadd.xlane.f32.xlu1 %v147_v2  ;;  %v675_v9 = vpop.eup %475 }
  0x92   :  { %142 = vadd.xlane.f32.xlu2 %v141_v3  ;;  %481 = vpow2.f32 %v120_v4 }
  0x93   :  { %v77_v5 = vpop.xlane.xlu2 %76  ;;  %v74_v6 = vpop.xlane.xlu1 %73 }
  0x94   :  { %v101_v7 = vsub.f32 %v622_v18, %v77_v5  ;;  %v71_v8 = vpop.xlane.xlu0 %70  ;;  %v100_v13 = vsub.f32 %v624_v19, %v74_v6  ;;  %v150_v18 = vsel %vm41_vm0, %v675_v9, 0.0 }
  0x95   :  { %v99_v10 = vsub.f32 %v626_v20, %v71_v8 }
  0x96   :  { %v678_v11 = vpop.eup %477  ;;  %v128_v12 = vmul.f32 1.442695, %v101_v7  ;;  %v126_v20 = vmul.f32 1.442695, %v100_v13 }
  0x97   :  { %v681_v14 = vpop.eup %479  ;;  %v124_v15 = vmul.f32 1.442695, %v99_v10  ;;  %v162_v16 = vsel %vm41_vm0, %v678_v11, 0.0 }
  0x98   :  { %483 = vpow2.f32 %v128_v12  ;;  %v156_v17 = vsel %vm41_vm0, %v681_v14, 0.0  ;;  %163 = vadd.xlane.f32.xlu0 %v162_v16  ;;  %v689_v22 = vpop.eup %481 }
  0x99   :  { %485 = vpow2.f32 %v124_v15  ;;  %157 = vadd.xlane.f32.xlu1 %v156_v17  ;;  %v159_v36 = vsel %vm41_vm0, %v689_v22, 0.0 }
  0x9a   :  { %151 = vadd.xlane.f32.xlu2 %v150_v18  ;;  %487 = vpow2.f32 %v126_v20 }
  0x9b   :  { %v86_v21 = vpop.xlane.xlu2 %85  ;;  %v83_v19 = vpop.xlane.xlu1 %82 }
  0x9c   :  { %v104_v23 = vsub.f32 %v634_v24, %v86_v21  ;;  %v80_v27 = vpop.xlane.xlu0 %79  ;;  %v103_v32 = vsub.f32 %v636_v25, %v83_v19 }
  0x9d   :  { %v102_v28 = vsub.f32 %v638_v26, %v80_v27 }
  0x9e   :  { %v693_v29 = vpop.eup %483  ;;  %v134_v31 = vmul.f32 1.442695, %v104_v23  ;;  %v132_v26 = vmul.f32 1.442695, %v103_v32 }
  0x9f   :  { %v696_v33 = vpop.eup %485  ;;  %v130_v34 = vmul.f32 1.442695, %v102_v28  ;;  %v171_v35 = vsel %vm41_vm0, %v693_v29, 0.0 }
  0xa0   :  { %489 = vpow2.f32 %v134_v31  ;;  %v165_v24 = vsel %vm41_vm0, %v696_v33, 0.0  ;;  %172 = vadd.xlane.f32.xlu0 %v171_v35  ;;  %v704_v37 = vpop.eup %487 }
  0xa1   :  { %491 = vpow2.f32 %v130_v34  ;;  %166 = vadd.xlane.f32.xlu1 %v165_v24  ;;  %v168_v43 = vsel %vm41_vm0, %v704_v37, 0.0 }
  0xa2   :  { %160 = vadd.xlane.f32.xlu2 %v159_v36  ;;  %493 = vpow2.f32 %v132_v26 }
  0xa4   :  { %v89_v25 = vpop.xlane.xlu0 %88 }
  0xa5   :  { %v105_v38 = vsub.f32 %v646_v30, %v89_v25 }
  0xa6   :  { %v707_v39 = vpop.eup %489 }
  0xa7   :  { %v709_v40 = vpop.eup %491  ;;  %v136_v41 = vmul.f32 1.442695, %v105_v38  ;;  %v180_v42 = vsel %vm41_vm0, %v707_v39, 0.0 }
  0xa8   :  { %v174_v44 = vsel %vm41_vm0, %v709_v40, 0.0  ;;  %181 = vadd.xlane.f32.xlu0 %v180_v42  ;;  %v717_v30 = vpop.eup %493 }
  0xa9   :  { %495 = vpow2.f32 %v136_v41  ;;  %175 = vadd.xlane.f32.xlu1 %v174_v44  ;;  %v177_v46 = vsel %vm41_vm0, %v717_v30, 0.0 }
  0xaa   :  { %169 = vadd.xlane.f32.xlu2 %v168_v43 }
  0xaf   :  { %v719_v45 = vpop.eup %495 }
  0xb0   :  { %v183_v48 = vsel %vm41_vm0, %v719_v45, 0.0 }
  0xb1   :  { %184 = vadd.xlane.f32.xlu1 %v183_v48 }
  0xb2   :  { %178 = vadd.xlane.f32.xlu2 %v177_v46 }
  0xfb   :  { %v146_v49 = vpop.xlane.xlu0 %145 }
  0xfc   :  { %v140_v51 = vpop.xlane.xlu1 %139  ;;  %497 = vrcp.f32 %v146_v49  ;;  %v223_v57 = vand.u32 2147483647, %v146_v49  ;;  %v225_v0 = vand.u32 2147483648, %v146_v49  ;;  %vm219_vm4 = vweird.f32 %v146_v49 }
  0xfd   :  { %499 = vrcp.f32 %v140_v51  ;;  %v195_v61 = vand.u32 2147483647, %v140_v51  ;;  %v197_v3 = vand.u32 2147483648, %v140_v51  ;;  %vm191_vm2 = vweird.f32 %v140_v51 }
  0xfe   :  { %vm738_vm6 = vcmp.eq.f32.partialorder %v223_v57, 8.507059e+37  ;;  %v226_v10 = vor.u32 1.1754944e-38, %v225_v0 }
  0xff   :  { %vm734_vm5 = vcmp.eq.f32.partialorder %v195_v61, 8.507059e+37  ;;  %v198_v15 = vor.u32 1.1754944e-38, %v197_v3 }
 0x102   :  { %v498_v52 = vpop.eup %497 }
 0x103   :  { %v500_v53 = vpop.eup %499  ;;  %v215_v54 = vmul.f32 %v498_v52, %v146_v49  ;;  %v725_v55 = vpop.xlane.xlu0 %154  ;;  %vm220_vm1 = vweird.f32 %v498_v52 }
 0x104   :  { %v187_v56 = vmul.f32 %v500_v53, %v140_v51  ;;  %v727_v58 = vpop.xlane.xlu1 %148  ;;  %501 = vrcp.f32 %v725_v55  ;;  %vm192_vm3 = vweird.f32 %v500_v53  ;;  %vm221_vm7 = vmor %vm219_vm4, %vm220_vm1  ;;  %vm261_vm9 = vweird.f32 %v725_v55 }
 0x105   :  { %v729_v60 = vpop.xlane.xlu2 %142  ;;  %v216_v63 = vsub.f32 1.0, %v215_v54  ;;  %503 = vrcp.f32 %v727_v58  ;;  %vm233_vm8 = vweird.f32 %v727_v58  ;;  %vm193_vm10 = vmor %vm191_vm2, %vm192_vm3  ;;  %v237_v18 = vand.u32 2147483647, %v727_v58 }
 0x106   :  { %v188_v2 = vsub.f32 1.0, %v187_v56  ;;  %505 = vrcp.f32 %v729_v60  ;;  %v239_v20 = vand.u32 2147483648, %v727_v58  ;;  %v209_v31 = vand.u32 2147483647, %v729_v60 }
 0x107   :  { %v217_v4 = vmul.f32 %v498_v52, %v216_v63  ;;  %v211_v24 = vand.u32 2147483648, %v729_v60  ;;  %v265_v43 = vand.u32 2147483647, %v725_v55  ;;  %vm769_vm13 = vcmp.eq.f32.partialorder %v237_v18, 8.507059e+37 }
 0x108   :  { %v189_v5 = vmul.f32 %v500_v53, %v188_v2  ;;  %vm205_vm14 = vweird.f32 %v729_v60  ;;  %vm784_vm3 = vcmp.eq.f32.partialorder %v209_v31, 8.507059e+37 }
 0x109   :  { %v218_v7 = vadd.f32 %v498_v52, %v217_v4 }
 0x10a   :  { %v502_v12 = vpop.eup %501  ;;  %v190_v13 = vadd.f32 %v500_v53, %v189_v5 }
 0x10b   :  { %v504_v16 = vpop.eup %503  ;;  %v222_v17 = vsel %vm221_vm7, %v498_v52, %v218_v7  ;;  %v257_v21 = vmul.f32 %v502_v12, %v725_v55  ;;  %vm262_vm11 = vweird.f32 %v502_v12  ;;  %v765_v44 = vpop.xlane.xlu0 %163  ;;  %v240_v52 = vor.u32 1.1754944e-38, %v239_v20 }
 0x10c   :  { %v506_v19 = vpop.eup %505  ;;  %v194_v23 = vsel %vm193_vm10, %v500_v53, %v190_v13  ;;  %v227_v27 = vsel %vm738_vm6, %v226_v10, %v222_v17  ;;  %v229_v28 = vmul.f32 %v504_v16, %v727_v58  ;;  %v758_v26 = vpop.xlane.xlu1 %157  ;;  %vm234_vm12 = vweird.f32 %v504_v16  ;;  %vm777_vm1 = vmor %vm261_vm9, %vm262_vm11 }
 0x10d   :  { %v751_v32 = vpop.xlane.xlu2 %151  ;;  %v199_v34 = vsel %vm734_vm5, %v198_v15, %v194_v23  ;;  %v412_v35 = vmul.f32 %v650_v47, %v227_v27  ;;  %v201_v36 = vmul.f32 %v506_v19, %v729_v60  ;;  %v258_v41 = vsub.f32 1.0, %v257_v21  ;;  %vm235_vm2 = vmor %vm233_vm8, %vm234_vm12 }
 0x10e   :  { %v410_v25 = vmul.f32 %v653_v50, %v199_v34  ;;  %v230_v38 = vsub.f32 1.0, %v229_v28  ;;  %507 = vrcp.f32 %v751_v32  ;;  %v267_v47 = vand.u32 2147483648, %v725_v55 }
 0x10f   :  { %428 = vst.msk [vmem:[#allocation5 + $0x10] sm:$0xff] %vm41_vm0, %v412_v35  ;;  %v202_v42 = vsub.f32 1.0, %v201_v36  ;;  %v259_v48 = vmul.f32 %v502_v12, %v258_v41  ;;  %509 = vrcp.f32 %v758_v26  ;;  %vm206_vm15 = vweird.f32 %v506_v19 }
 0x110   :  { %426 = vst.msk [vmem:[#allocation5] sm:$0xff] %vm41_vm0, %v410_v25  ;;  %v231_v46 = vmul.f32 %v504_v16, %v230_v38  ;;  %511 = vrcp.f32 %v765_v44  ;;  %v212_v60 = vor.u32 1.1754944e-38, %v211_v24  ;;  %v268_v61 = vor.u32 1.1754944e-38, %v267_v47  ;;  %vm207_vm4 = vmor %vm205_vm14, %vm206_vm15 }
 0x111   :  { %v203_v49 = vmul.f32 %v506_v19, %v202_v42  ;;  %v260_v53 = vadd.f32 %v502_v12, %v259_v48  ;;  %vm266_vm5 = vcmp.eq.f32.partialorder %v265_v43, 8.507059e+37  ;;  %v251_v2 = vand.u32 2147483647, %v751_v32 }
 0x112   :  { %v232_v51 = vadd.f32 %v504_v16, %v231_v46  ;;  %vm247_vm6 = vweird.f32 %v751_v32  ;;  %vm275_vm8 = vweird.f32 %v758_v26  ;;  %v281_v27 = vand.u32 2147483648, %v758_v26 }
 0x113   :  { %v204_v56 = vadd.f32 %v506_v19, %v203_v49  ;;  %v264_v55 = vsel %vm777_vm1, %v502_v12, %v260_v53  ;;  %vm807_vm7 = vcmp.eq.f32.partialorder %v251_v2, 8.507059e+37  ;;  %v816_v23 = vpop.xlane.xlu0 %172  ;;  %v307_v28 = vand.u32 2147483647, %v765_v44 }
 0x114   :  { %v508_v63 = vpop.eup %507  ;;  %v236_v0 = vsel %vm235_vm2, %v504_v16, %v232_v51  ;;  %v269_v4 = vsel %vm266_vm5, %v268_v61, %v264_v55  ;;  %v253_v16 = vand.u32 2147483648, %v751_v32  ;;  %v804_v18 = vpop.xlane.xlu1 %166  ;;  %v309_v31 = vand.u32 2147483648, %v765_v44 }
 0x115   :  { %v241_v58 = vsel %vm769_vm13, %v240_v52, %v236_v0  ;;  %v208_v3 = vsel %vm207_vm4, %v506_v19, %v204_v56  ;;  %v243_v5 = vmul.f32 %v508_v63, %v751_v32  ;;  %v794_v6 = vpop.xlane.xlu2 %160  ;;  %v510_v7 = vpop.eup %509  ;;  %v415_v12 = vmul.f32 %v661_v59, %v269_v4 }
 0x116   :  { %v413_v8 = vmul.f32 %v664_v62, %v241_v58  ;;  %v213_v10 = vsel %vm784_vm3, %v212_v60, %v208_v3  ;;  %v271_v17 = vmul.f32 %v510_v7, %v758_v26  ;;  %v512_v20 = vpop.eup %511  ;;  %v279_v59 = vand.u32 2147483647, %v758_v26 }
 0x117   :  { %v411_v13 = vmul.f32 %v668_v1, %v213_v10  ;;  %v244_v15 = vsub.f32 1.0, %v243_v5  ;;  %513 = vrcp.f32 %v794_v6  ;;  %vm248_vm9 = vweird.f32 %v508_v63  ;;  %431 = vst.msk [vmem:[#allocation5 + $0x28] sm:$0xff] %vm41_vm0, %v415_v12 }
 0x118   :  { %429 = vst.msk [vmem:[#allocation5 + $0x18] sm:$0xff] %vm41_vm0, %v413_v8  ;;  %v272_v21 = vsub.f32 1.0, %v271_v17  ;;  %v299_v19 = vmul.f32 %v512_v20, %v765_v44  ;;  %515 = vrcp.f32 %v804_v18  ;;  %vm276_vm10 = vweird.f32 %v510_v7  ;;  %vm249_vm11 = vmor %vm247_vm6, %vm248_vm9 }
 0x119   :  { %427 = vst.msk [vmem:[#allocation5 + $0x8] sm:$0xff] %vm41_vm0, %v411_v13  ;;  %v245_v1 = vmul.f32 %v508_v63, %v244_v15  ;;  %v254_v24 = vor.u32 1.1754944e-38, %v253_v16  ;;  %vm825_vm12 = vcmp.eq.f32.partialorder %v279_v59, 8.507059e+37  ;;  %vm303_vm13 = vweird.f32 %v765_v44  ;;  %vm277_vm15 = vmor %vm275_vm8, %vm276_vm10 }
 0x11a   :  { %v273_v35 = vmul.f32 %v510_v7, %v272_v21  ;;  %v300_v36 = vsub.f32 1.0, %v299_v19  ;;  %517 = vrcp.f32 %v816_v23  ;;  %vm304_vm14 = vweird.f32 %v512_v20 }
 0x11b   :  { %v246_v34 = vadd.f32 %v508_v63, %v245_v1  ;;  %v282_v32 = vor.u32 1.1754944e-38, %v281_v27  ;;  %vm835_vm1 = vcmp.eq.f32.partialorder %v307_v28, 8.507059e+37  ;;  %v310_v48 = vor.u32 1.1754944e-38, %v309_v31  ;;  %vm305_vm2 = vmor %vm303_vm13, %vm304_vm14 }
 0x11c   :  { %v274_v41 = vadd.f32 %v510_v7, %v273_v35  ;;  %v301_v42 = vmul.f32 %v512_v20, %v300_v36  ;;  %vm289_vm3 = vweird.f32 %v794_v6  ;;  %v293_v26 = vand.u32 2147483647, %v794_v6  ;;  %v857_v44 = vpop.xlane.xlu1 %175 }
 0x11d   :  { %v250_v38 = vsel %vm249_vm11, %v508_v63, %v246_v34  ;;  %v514_v43 = vpop.eup %513  ;;  %v841_v53 = vpop.xlane.xlu2 %169  ;;  %v295_v57 = vand.u32 2147483648, %v794_v6  ;;  %vm317_vm5 = vweird.f32 %v804_v18  ;;  %v321_v5 = vand.u32 2147483647, %v804_v18 }
 0x11e   :  { %v255_v47 = vsel %vm807_vm7, %v254_v24, %v250_v38  ;;  %v278_v49 = vsel %vm277_vm15, %v510_v7, %v274_v41  ;;  %v302_v51 = vadd.f32 %v512_v20, %v301_v42  ;;  %v285_v52 = vmul.f32 %v514_v43, %v794_v6  ;;  %v516_v54 = vpop.eup %515 }
 0x11f   :  { %v414_v50 = vmul.f32 %v675_v9, %v255_v47  ;;  %v283_v56 = vsel %vm825_vm12, %v282_v32, %v278_v49  ;;  %v313_v63 = vmul.f32 %v516_v54, %v804_v18  ;;  %vm290_vm4 = vweird.f32 %v514_v43 }
 0x120   :  { %v416_v9 = vmul.f32 %v681_v14, %v283_v56  ;;  %v306_v60 = vsel %vm305_vm2, %v512_v20, %v302_v51  ;;  %v286_v61 = vsub.f32 1.0, %v285_v52  ;;  %v518_v0 = vpop.eup %517  ;;  %519 = vrcp.f32 %v841_v53  ;;  %vm291_vm8 = vmor %vm289_vm3, %vm290_vm4 }
 0x121   :  { %430 = vst.msk [vmem:[#allocation5 + $0x20] sm:$0xff] %vm41_vm0, %v414_v50  ;;  %v311_v55 = vsel %vm835_vm1, %v310_v48, %v306_v60  ;;  %v314_v58 = vsub.f32 1.0, %v313_v63  ;;  %v341_v3 = vmul.f32 %v518_v0, %v816_v23  ;;  %vm862_vm6 = vcmp.eq.f32.partialorder %v293_v26, 8.507059e+37 }
 0x122   :  { %432 = vst.msk [vmem:[#allocation5 + $0x30] sm:$0xff] %vm41_vm0, %v416_v9  ;;  %v418_v2 = vmul.f32 %v678_v11, %v311_v55  ;;  %v287_v14 = vmul.f32 %v514_v43, %v286_v61  ;;  %vm318_vm7 = vweird.f32 %v516_v54  ;;  %v323_v7 = vand.u32 2147483648, %v804_v18  ;;  %v870_v11 = vpop.xlane.xlu0 %181 }
 0x123   :  { %v315_v10 = vmul.f32 %v516_v54, %v314_v58  ;;  %v342_v12 = vsub.f32 1.0, %v341_v3  ;;  %521 = vrcp.f32 %v857_v44  ;;  %v296_v13 = vor.u32 1.1754944e-38, %v295_v57  ;;  %vm319_vm11 = vmor %vm317_vm5, %vm318_vm7 }
 0x124   :  { %434 = vst.msk [vmem:[#allocation5 + $0x40] sm:$0xff] %vm41_vm0, %v418_v2  ;;  %v288_v8 = vadd.f32 %v514_v43, %v287_v14  ;;  %vm345_vm9 = vweird.f32 %v816_v23  ;;  %v349_v15 = vand.u32 2147483647, %v816_v23  ;;  %v351_v16 = vand.u32 2147483648, %v816_v23  ;;  %v895_v23 = vpop.xlane.xlu1 %184 }
 0x125   :  { %v316_v20 = vadd.f32 %v516_v54, %v315_v10  ;;  %v343_v62 = vmul.f32 %v518_v0, %v342_v12  ;;  %vm346_vm10 = vweird.f32 %v518_v0  ;;  %vm322_vm12 = vcmp.eq.f32.partialorder %v321_v5, 8.507059e+37  ;;  %v888_v35 = vpop.xlane.xlu2 %178 }
 0x126   :  { %v292_v17 = vsel %vm291_vm8, %v514_v43, %v288_v8  ;;  %v520_v59 = vpop.eup %519  ;;  %v324_v6 = vor.u32 1.1754944e-38, %v323_v7  ;;  %523 = vrcp.f32 %v870_v11  ;;  %vm347_vm13 = vmor %vm345_vm9, %vm346_vm10  ;;  %vm350_vm14 = vcmp.eq.f32.partialorder %v349_v15, 8.507059e+37 }
 0x127   :  { %v297_v1 = vsel %vm862_vm6, %v296_v13, %v292_v17  ;;  %v320_v19 = vsel %vm319_vm11, %v516_v54, %v316_v20  ;;  %v344_v27 = vadd.f32 %v518_v0, %v343_v62  ;;  %v327_v28 = vmul.f32 %v520_v59, %v841_v53 }
 0x128   :  { %v417_v21 = vmul.f32 %v689_v22, %v297_v1  ;;  %v325_v31 = vsel %vm322_vm12, %v324_v6, %v320_v19  ;;  %v352_v34 = vor.u32 1.1754944e-38, %v351_v16  ;;  %v335_v22 = vand.u32 2147483647, %v841_v53 }
 0x129   :  { %v522_v18 = vpop.eup %521  ;;  %v419_v36 = vmul.f32 %v696_v33, %v325_v31  ;;  %v348_v24 = vsel %vm347_vm13, %v518_v0, %v344_v27  ;;  %v328_v25 = vsub.f32 1.0, %v327_v28  ;;  %v337_v41 = vand.u32 2147483648, %v841_v53 }
 0x12a   :  { %433 = vst.msk [vmem:[#allocation5 + $0x38] sm:$0xff] %vm41_vm0, %v417_v21  ;;  %v353_v38 = vsel %vm350_vm14, %v352_v34, %v348_v24  ;;  %v355_v42 = vmul.f32 %v522_v18, %v857_v44  ;;  %vm332_vm15 = vweird.f32 %v520_v59  ;;  %525 = vrcp.f32 %v888_v35 }
 0x12b   :  { %435 = vst.msk [vmem:[#allocation5 + $0x48] sm:$0xff] %vm41_vm0, %v419_v36  ;;  %v421_v43 = vmul.f32 %v693_v29, %v353_v38  ;;  %v329_v47 = vmul.f32 %v520_v59, %v328_v25  ;;  %vm331_vm1 = vweird.f32 %v841_v53  ;;  %v365_v46 = vand.u32 2147483648, %v857_v44 }
 0x12c   :  { %v524_v33 = vpop.eup %523  ;;  %v356_v32 = vsub.f32 1.0, %v355_v42  ;;  %vm336_vm2 = vcmp.eq.f32.partialorder %v335_v22, 8.507059e+37  ;;  %527 = vrcp.f32 %v895_v23  ;;  %vm333_vm3 = vmor %vm331_vm1, %vm332_vm15  ;;  %v338_v29 = vor.u32 1.1754944e-38, %v337_v41 }
 0x12d   :  { %437 = vst.msk [vmem:[#allocation5 + $0x58] sm:$0xff] %vm41_vm0, %v421_v43  ;;  %v330_v48 = vadd.f32 %v520_v59, %v329_v47  ;;  %v383_v50 = vmul.f32 %v524_v33, %v870_v11  ;;  %vm360_vm4 = vweird.f32 %v522_v18  ;;  %v363_v51 = vand.u32 2147483647, %v857_v44 }
 0x12e   :  { %v357_v49 = vmul.f32 %v522_v18, %v356_v32  ;;  %vm359_vm5 = vweird.f32 %v857_v44  ;;  %vm387_vm6 = vweird.f32 %v870_v11  ;;  %v366_v26 = vor.u32 1.1754944e-38, %v365_v46 }
 0x12f   :  { %v334_v52 = vsel %vm333_vm3, %v520_v59, %v330_v48  ;;  %v384_v53 = vsub.f32 1.0, %v383_v50  ;;  %v393_v57 = vand.u32 2147483648, %v870_v11  ;;  %vm361_vm7 = vmor %vm359_vm5, %vm360_vm4  ;;  %vm388_vm8 = vweird.f32 %v524_v33 }
 0x130   :  { %v339_v54 = vsel %vm336_vm2, %v338_v29, %v334_v52  ;;  %v358_v56 = vadd.f32 %v522_v18, %v357_v49  ;;  %v526_v9 = vpop.eup %525  ;;  %v391_v63 = vand.u32 2147483647, %v870_v11  ;;  %vm364_vm9 = vcmp.eq.f32.partialorder %v363_v51, 8.507059e+37  ;;  %vm389_vm10 = vmor %vm387_vm6, %vm388_vm8 }
 0x131   :  { %v420_v60 = vmul.f32 %v704_v37, %v339_v54  ;;  %v385_v61 = vmul.f32 %v524_v33, %v384_v53  ;;  %v369_v55 = vmul.f32 %v526_v9, %v888_v35  ;;  %v394_v37 = vor.u32 1.1754944e-38, %v393_v57 }
 0x132   :  { %v362_v0 = vsel %vm361_vm7, %v522_v18, %v358_v56  ;;  %v528_v44 = vpop.eup %527  ;;  %vm392_vm11 = vcmp.eq.f32.partialorder %v391_v63, 8.507059e+37  ;;  %v377_v7 = vand.u32 2147483647, %v888_v35  ;;  %v379_v8 = vand.u32 2147483648, %v888_v35 }
 0x133   :  { %436 = vst.msk [vmem:[#allocation5 + $0x50] sm:$0xff] %vm41_vm0, %v420_v60  ;;  %v367_v2 = vsel %vm364_vm9, %v366_v26, %v362_v0  ;;  %v386_v14 = vadd.f32 %v524_v33, %v385_v61  ;;  %v370_v3 = vsub.f32 1.0, %v369_v55  ;;  %v397_v4 = vmul.f32 %v528_v44, %v895_v23 }
 0x134   :  { %v422_v58 = vmul.f32 %v709_v40, %v367_v2  ;;  %vm374_vm12 = vweird.f32 %v526_v9  ;;  %vm373_vm13 = vweird.f32 %v888_v35  ;;  %v407_v11 = vand.u32 2147483648, %v895_v23 }
 0x135   :  { %v390_v5 = vsel %vm389_vm10, %v524_v33, %v386_v14  ;;  %v371_v12 = vmul.f32 %v526_v9, %v370_v3  ;;  %v398_v13 = vsub.f32 1.0, %v397_v4  ;;  %vm402_vm14 = vweird.f32 %v528_v44  ;;  %vm375_vm15 = vmor %vm373_vm13, %vm374_vm12 }
 0x136   :  { %438 = vst.msk [vmem:[#allocation5 + $0x60] sm:$0xff] %vm41_vm0, %v422_v58  ;;  %v395_v10 = vsel %vm392_vm11, %v394_v37, %v390_v5  ;;  %v405_v17 = vand.u32 2147483647, %v895_v23  ;;  %v380_v20 = vor.u32 1.1754944e-38, %v379_v8  ;;  %vm378_vm1 = vcmp.eq.f32.partialorder %v377_v7, 8.507059e+37 }
 0x137   :  { %v424_v40 = vmul.f32 %v707_v39, %v395_v10  ;;  %v372_v15 = vadd.f32 %v526_v9, %v371_v12  ;;  %v399_v16 = vmul.f32 %v528_v44, %v398_v13  ;;  %vm401_vm2 = vweird.f32 %v895_v23 }
 0x138   :  { %vm403_vm3 = vmor %vm401_vm2, %vm402_vm14  ;;  %v408_v39 = vor.u32 1.1754944e-38, %v407_v11  ;;  %vm406_vm4 = vcmp.eq.f32.partialorder %v405_v17, 8.507059e+37 }
 0x139   :  { %440 = vst.msk [vmem:[#allocation5 + $0x70] sm:$0xff] %vm41_vm0, %v424_v40  ;;  %v376_v62 = vsel %vm375_vm15, %v526_v9, %v372_v15  ;;  %v400_v59 = vadd.f32 %v528_v44, %v399_v16 }
 0x13a   :  { %v381_v1 = vsel %vm378_vm1, %v380_v20, %v376_v62 }
 0x13b   :  { %v423_v6 = vmul.f32 %v717_v30, %v381_v1  ;;  %v404_v21 = vsel %vm403_vm3, %v528_v44, %v400_v59 }
 0x13c   :  { %v409_v19 = vsel %vm406_vm4, %v408_v39, %v404_v21 }
 0x13d   :  { %439 = vst.msk [vmem:[#allocation5 + $0x68] sm:$0xff] %vm41_vm0, %v423_v6  ;;  %v425_v27 = vmul.f32 %v719_v45, %v409_v19 }
 0x13f   :  { %441 = vst.msk [vmem:[#allocation5 + $0x78] sm:$0xff] %vm41_vm0, %v425_v27 }
 0x140   :  { %454 = dma.vmem_to_hbm [thread:$0]  %s447_s13, 2048, %s449_s16, [#allocation4], %s582_s11, %s582_s11, %s583_s12  }
 0x141   :  { %579 = dma.done.wait [#allocation4], 2048  }
 0x142   :  { %580 = vsyncadd [#allocation4], 4294965248 }
 0x143   :  { %459 = vsyncpa [#allocation3], 1 }
 0x144   :  { %460 = vsyncpa [#allocation4], 1 }

</bundles_post_ra>
